<compile_context>
chip_gen: v7x
topology: tpu7x:2x2x1
jax: 0.10.0
libtpu: 0.0.40
codegen_flags: <defaults>
</compile_context>

<pallas_src>
import functools
import math

import jax
import jax.numpy as jnp
import numpy as np
from jax import lax
from jax.experimental import pallas as pl
from jax.experimental.pallas import tpu as pltpu


_MASK_VALUE = -0.7 * float(np.finfo(np.float32).max)   # finite "minus inf"
_VMEM_LIMIT = 48 * 1024 * 1024                         # headroom below v7x 64MiB


# --------------------------------------------------------------------------
# Kernel A: QKV projection -> head-major Q/K/V
# --------------------------------------------------------------------------
def _qkv_proj_kernel(x_ref, wq_ref, wk_ref, wv_ref, bq_ref, bk_ref, bv_ref,
                     q_ref, k_ref, v_ref, *, n_head, head_dim):
    x = x_ref[0]                                        # (tt, C), compute dtype
    for w_ref, b_ref, out_ref in ((wq_ref, bq_ref, q_ref),
                                  (wk_ref, bk_ref, k_ref),
                                  (wv_ref, bv_ref, v_ref)):
        y = jnp.dot(x, w_ref[...], preferred_element_type=jnp.float32)
        y = (y + b_ref[...]).astype(out_ref.dtype)      # (tt, C)
        # Split the lane dim into heads with static slices (cheap, once per
        # projection tile; avoids in-kernel reshape/transpose).
        for h in range(n_head):
            out_ref[0, h] = y[:, h * head_dim:(h + 1) * head_dim]


# --------------------------------------------------------------------------
# Kernel B: flash-style causal attention + fused output projection
# --------------------------------------------------------------------------
def _flash_attn_kernel(q_ref, k_ref, v_ref, wproj_ref, bproj_ref, o_ref,
                       m_sc, l_sc, acc_sc,
                       *, n_head, q_tile, kv_tile, scale, approx_recip):
    qi = pl.program_id(1)
    ki = pl.program_id(2)

    q_start = qi * q_tile
    kv_start = ki * kv_tile
    q_end = q_start + (q_tile - 1)                      # inclusive
    kv_end = kv_start + (kv_tile - 1)                   # inclusive
    last_needed = (q_start + q_tile - 1) // kv_tile     # last causal kv tile

    @pl.when(ki == 0)
    def _init():
        m_sc[...] = jnp.full_like(m_sc, -jnp.inf)
        l_sc[...] = jnp.zeros_like(l_sc)
        acc_sc[...] = jnp.zeros_like(acc_sc)

    do_work = kv_start <= q_end          # tile not fully masked (causal skip)
    straddles = kv_end > q_start         # tile crosses the diagonal -> mask

    def flash_step(apply_mask):
        q = q_ref[0]                                    # (H, tq, D)
        k = k_ref[0]                                    # (H, tk, D)
        v = v_ref[0]                                    # (H, tk, D)
        # Batched over heads; contracts last dims (no explicit k.T).
        s = jnp.einsum('htd,hsd->hts', q, k,
                       preferred_element_type=jnp.float32) * scale
        if apply_mask:
            rows = q_start + lax.broadcasted_iota(
                jnp.int32, (1, q_tile, kv_tile), 1)
            cols = kv_start + lax.broadcasted_iota(
                jnp.int32, (1, q_tile, kv_tile), 2)
            s = jnp.where(rows >= cols, s, _MASK_VALUE)
        m_prev = m_sc[...]                              # (H, tq, 1)
        m_new = jnp.maximum(m_prev, jnp.max(s, axis=-1, keepdims=True))
        alpha = jnp.exp(m_prev - m_new)
        p = jnp.exp(s - m_new)                          # (H, tq, tk) f32
        l_sc[...] = alpha * l_sc[...] + jnp.sum(p, axis=-1, keepdims=True)
        acc_sc[...] = alpha * acc_sc[...] + jnp.einsum(
            'hts,hsd->htd', p.astype(v.dtype), v,
            preferred_element_type=jnp.float32)
        m_sc[...] = m_new

    @pl.when(jnp.logical_and(do_work, straddles))
    def _masked_step():
        flash_step(True)

    @pl.when(jnp.logical_and(do_work, jnp.logical_not(straddles)))
    def _unmasked_step():
        flash_step(False)

    @pl.when(ki == last_needed)
    def _finalize():
        if approx_recip:
            inv_l = pl.reciprocal(l_sc[...], approx=True)   # EUP, ~free
        else:
            inv_l = 1.0 / l_sc[...]                         # exact (f32 mode)
        y = acc_sc[...] * inv_l                             # (H, tq, D) f32
        # Merge heads -> (tq, C), then ONE full-width output projection.
        y2d = jnp.concatenate([y[h] for h in range(n_head)], axis=-1)
        out = jnp.dot(y2d.astype(wproj_ref.dtype), wproj_ref[...],
                      preferred_element_type=jnp.float32)
        out = out + bproj_ref[...]
        o_ref[0] = out.astype(o_ref.dtype)


# --------------------------------------------------------------------------
# Wrapper
# --------------------------------------------------------------------------
def causal_self_attention(x, w_attn_t, b_attn, w_proj_t, b_proj, n_head, *,
                          q_tile=128, kv_tile=128, proj_tile=256,
                          compute_dtype=None):
    """x: (B, T, C); w_attn_t: (C, 3C) (=c_attn.weight.T); w_proj_t: (C, C)."""
    B, T, C = x.shape
    assert C % n_head == 0, "n_head must divide n_embd"
    head_dim = C // n_head

    cd = np.dtype(compute_dtype) if compute_dtype is not None else np.dtype(x.dtype)
    approx_recip = bool(cd != np.dtype(jnp.float32))

    tq = min(q_tile, T)
    tk = min(kv_tile, T)
    tt = min(proj_tile, T)
    assert T % tq == 0 and T % tk == 0 and T % tt == 0, "T must divide tiles"

    scale = 1.0 / math.sqrt(head_dim)

    # Host-side prep (one-time): split fused QKV into three (C, C) operands,
    # cast MXU operands to the compute dtype; biases stay f32.
    x_c = x.astype(cd)
    wq = w_attn_t[:, 0 * C:1 * C].astype(cd)
    wk = w_attn_t[:, 1 * C:2 * C].astype(cd)
    wv = w_attn_t[:, 2 * C:3 * C].astype(cd)
    bq = b_attn[0 * C:1 * C].reshape(1, C).astype(jnp.float32)
    bk = b_attn[1 * C:2 * C].reshape(1, C).astype(jnp.float32)
    bv = b_attn[2 * C:3 * C].reshape(1, C).astype(jnp.float32)
    wproj = w_proj_t.astype(cd)
    bproj = b_proj.reshape(1, C).astype(jnp.float32)

    # ---------------- Kernel A: QKV projection ----------------
    qkv_kernel = functools.partial(
        _qkv_proj_kernel, n_head=n_head, head_dim=head_dim)
    qkv_shape = jax.ShapeDtypeStruct((B, n_head, T, head_dim), cd)
    q, k, v = pl.pallas_call(
        qkv_kernel,
        out_shape=[qkv_shape, qkv_shape, qkv_shape],
        grid_spec=pltpu.PrefetchScalarGridSpec(
            num_scalar_prefetch=0,
            grid=(B, T // tt),
            in_specs=[
                pl.BlockSpec((1, tt, C), lambda b, t: (b, t, 0)),     # x
                pl.BlockSpec((C, C), lambda b, t: (0, 0)),            # Wq
                pl.BlockSpec((C, C), lambda b, t: (0, 0)),            # Wk
                pl.BlockSpec((C, C), lambda b, t: (0, 0)),            # Wv
                pl.BlockSpec((1, C), lambda b, t: (0, 0)),            # bq
                pl.BlockSpec((1, C), lambda b, t: (0, 0)),            # bk
                pl.BlockSpec((1, C), lambda b, t: (0, 0)),            # bv
            ],
            out_specs=[
                pl.BlockSpec((1, n_head, tt, head_dim),
                             lambda b, t: (b, 0, t, 0)) for _ in range(3)
            ],
        ),
        compiler_params=pltpu.CompilerParams(
            dimension_semantics=("parallel", "parallel"),
            vmem_limit_bytes=_VMEM_LIMIT),
    )(x_c, wq, wk, wv, bq, bk, bv)

    # ---------------- Kernel B: flash attention + output projection ----------
    attn_kernel = functools.partial(
        _flash_attn_kernel, n_head=n_head, q_tile=tq, kv_tile=tk,
        scale=scale, approx_recip=approx_recip)

    def kv_index_map(b, qi, ki):
        # Clamp past the causal frontier: skipped kv tiles map to the last
        # needed block, so no new K/V DMA is issued for fully-masked tiles.
        last_needed = (qi * tq + (tq - 1)) // tk
        return (b, 0, jnp.minimum(ki, last_needed), 0)

    out = pl.pallas_call(
        attn_kernel,
        out_shape=jax.ShapeDtypeStruct((B, T, C), x.dtype),
        grid_spec=pltpu.PrefetchScalarGridSpec(
            num_scalar_prefetch=0,
            grid=(B, T // tq, T // tk),
            in_specs=[
                pl.BlockSpec((1, n_head, tq, head_dim),
                             lambda b, qi, ki: (b, 0, qi, 0)),        # Q
                pl.BlockSpec((1, n_head, tk, head_dim), kv_index_map),  # K
                pl.BlockSpec((1, n_head, tk, head_dim), kv_index_map),  # V
                pl.BlockSpec((C, C), lambda b, qi, ki: (0, 0)),       # Wproj
                pl.BlockSpec((1, C), lambda b, qi, ki: (0, 0)),       # bproj
            ],
            out_specs=pl.BlockSpec((1, tq, C), lambda b, qi, ki: (b, qi, 0)),
            scratch_shapes=[
                pltpu.VMEM((n_head, tq, 1), jnp.float32),             # m
                pltpu.VMEM((n_head, tq, 1), jnp.float32),             # l
                pltpu.VMEM((n_head, tq, head_dim), jnp.float32),      # acc
            ],
        ),
        compiler_params=pltpu.CompilerParams(
            dimension_semantics=("parallel", "parallel", "arbitrary"),
            vmem_limit_bytes=_VMEM_LIMIT),
    )(q, k, v, wproj, bproj)
    return out


# --------------------------------------------------------------------------
# Pure-JAX reference (mirrors the PyTorch forward) and self-test
# --------------------------------------------------------------------------
def _reference(x, w_attn_t, b_attn, w_proj_t, b_proj, n_head):
    B, T, C = x.shape
    hd = C // n_head
    qkv = x @ w_attn_t + b_attn                              # (B, T, 3C)
    q, k, v = jnp.split(qkv, 3, axis=-1)
    q = q.reshape(B, T, n_head, hd).transpose(0, 2, 1, 3)
    k = k.reshape(B, T, n_head, hd).transpose(0, 2, 1, 3)
    v = v.reshape(B, T, n_head, hd).transpose(0, 2, 1, 3)
    att = (q @ jnp.swapaxes(k, -1, -2)) / math.sqrt(hd)
    mask = jnp.tril(jnp.ones((T, T), bool))[None, None]
    att = jnp.where(mask, att, -jnp.inf)
    att = jax.nn.softmax(att, axis=-1)
    y = att @ v
    y = y.transpose(0, 2, 1, 3).reshape(B, T, C)
    return y @ w_proj_t + b_proj


def _make_params(key, C):
    k1, k2, k3, k4 = jax.random.split(key, 4)
    bound = 1.0 / math.sqrt(C)
    w_attn = jax.random.uniform(k1, (3 * C, C), jnp.float32, -bound, bound)
    b_attn = jax.random.uniform(k2, (3 * C,), jnp.float32, -bound, bound)
    w_proj = jax.random.uniform(k3, (C, C), jnp.float32, -bound, bound)
    b_proj = jax.random.uniform(k4, (C,), jnp.float32, -bound, bound)
    return w_attn.T, b_attn, w_proj.T, b_proj


if __name__ == "__main__":
    n_head, n_embd, block_size = 4, 32, 8
    B, T, C = 2, block_size, n_embd

    key = jax.random.PRNGKey(0)
    kx, kx2, kp = jax.random.split(key, 3)
    w_attn_t, b_attn, w_proj_t, b_proj = _make_params(kp, C)

    # ---- 1) block_size shape, single tile, f32 MXU path ----
    x = jax.random.normal(kx, (B, T, C), dtype=jnp.float32)
    ref = _reference(x, w_attn_t, b_attn, w_proj_t, b_proj, n_head)
    out = causal_self_attention(x, w_attn_t, b_attn, w_proj_t, b_proj, n_head)
    out = jax.block_until_ready(out)
    np.testing.assert_allclose(np.asarray(out), np.asarray(ref),
                               rtol=1e-4, atol=1e-4)

    # ---- 2) bf16 MXU-operand mode (v6e/v7x throughput path), f32 accum ----
    out_bf16 = causal_self_attention(x, w_attn_t, b_attn, w_proj_t, b_proj,
                                     n_head, compute_dtype=jnp.bfloat16)
    out_bf16 = jax.block_until_ready(out_bf16)
    np.testing.assert_allclose(np.asarray(out_bf16), np.asarray(ref),
                               rtol=5e-2, atol=5e-2)

    # ---- 3) longer sequence with small tiles: exercises multi-tile flash
    #         loop, causal tile skipping, diagonal-only masking, finalize ----
    T2 = 32
    x2 = jax.random.normal(kx2, (B, T2, C), dtype=jnp.float32)
    ref2 = _reference(x2, w_attn_t, b_attn, w_proj_t, b_proj, n_head)
    out2 = causal_self_attention(x2, w_attn_t, b_attn, w_proj_t, b_proj,
                                 n_head, q_tile=8, kv_tile=8, proj_tile=16)
    out2 = jax.block_until_ready(out2)
    np.testing.assert_allclose(np.asarray(out2), np.asarray(ref2),
                               rtol=1e-4, atol=1e-4)

    print("KERNEL_OK")
</pallas_src>

<mosaic_0001>
module attributes {stable_mosaic.version = 11 : i64} {
  func.func @_qkv_proj_kernel(%arg0: i32, %arg1: i32, %arg2: memref<1x8x32xf32, #tpu.memory_space<vmem>>, %arg3: memref<32x32xf32, #tpu.memory_space<vmem>>, %arg4: memref<32x32xf32, #tpu.memory_space<vmem>>, %arg5: memref<32x32xf32, #tpu.memory_space<vmem>>, %arg6: memref<1x32xf32, #tpu.memory_space<vmem>>, %arg7: memref<1x32xf32, #tpu.memory_space<vmem>>, %arg8: memref<1x32xf32, #tpu.memory_space<vmem>>, %arg9: memref<1x4x8x8xf32, #tpu.memory_space<vmem>>, %arg10: memref<1x4x8x8xf32, #tpu.memory_space<vmem>>, %arg11: memref<1x4x8x8xf32, #tpu.memory_space<vmem>>) attributes {dimension_semantics = [#tpu.dimension_semantics<parallel>, #tpu.dimension_semantics<parallel>], iteration_bounds = array<i64: 2, 1>, scalar_prefetch = 0 : i64, scratch_operands = 0 : i64, tpu.core_type = #tpu.core_type<tc>, window_params = [{transform_indices = @transform_0, window_bounds = array<i64: 1, 8, 32>}, {pipeline_mode = #tpu.pipeline_mode<synchronous>, transform_indices = @transform_1, window_bounds = array<i64: 32, 32>}, {pipeline_mode = #tpu.pipeline_mode<synchronous>, transform_indices = @transform_2, window_bounds = array<i64: 32, 32>}, {pipeline_mode = #tpu.pipeline_mode<synchronous>, transform_indices = @transform_3, window_bounds = array<i64: 32, 32>}, {pipeline_mode = #tpu.pipeline_mode<synchronous>, transform_indices = @transform_4, window_bounds = array<i64: 1, 32>}, {pipeline_mode = #tpu.pipeline_mode<synchronous>, transform_indices = @transform_5, window_bounds = array<i64: 1, 32>}, {pipeline_mode = #tpu.pipeline_mode<synchronous>, transform_indices = @transform_6, window_bounds = array<i64: 1, 32>}, {transform_indices = @transform_7, window_bounds = array<i64: 1, 4, 8, 8>}, {transform_indices = @transform_8, window_bounds = array<i64: 1, 4, 8, 8>}, {transform_indices = @transform_9, window_bounds = array<i64: 1, 4, 8, 8>}]} {
    %c0 = arith.constant 0 : index
    %c0_0 = arith.constant 0 : index
    %c0_1 = arith.constant 0 : index
    %0 = vector.load %arg2[%c0, %c0_0, %c0_1] : memref<1x8x32xf32, #tpu.memory_space<vmem>>, vector<1x8x32xf32>
    %1 = vector.shape_cast %0 : vector<1x8x32xf32> to vector<8x32xf32>
    %c0_2 = arith.constant 0 : index
    %c0_3 = arith.constant 0 : index
    %2 = vector.load %arg3[%c0_2, %c0_3] : memref<32x32xf32, #tpu.memory_space<vmem>>, vector<32x32xf32>
    %cst = arith.constant dense<0.000000e+00> : vector<8x32xf32>
    %3 = tpu.matmul %1, %2, %cst {dimension_numbers = #tpu.dot_dimension_numbers<[1], [0], [0], [1], [0, 0, 1, 1], [], []>} : vector<8x32xf32>, vector<32x32xf32>, vector<8x32xf32> -> vector<8x32xf32>
    %c0_4 = arith.constant 0 : index
    %c0_5 = arith.constant 0 : index
    %4 = vector.load %arg6[%c0_4, %c0_5] : memref<1x32xf32, #tpu.memory_space<vmem>>, vector<1x32xf32>
    %5 = vector.broadcast %4 : vector<1x32xf32> to vector<8x32xf32>
    %6 = arith.addf %3, %5 : vector<8x32xf32>
    %7 = vector.extract_strided_slice %6 {offsets = [0, 0], sizes = [8, 8], strides = [1, 1]} : vector<8x32xf32> to vector<8x8xf32>
    %c0_6 = arith.constant 0 : index
    %c0_7 = arith.constant 0 : index
    %c0_8 = arith.constant 0 : index
    %c0_9 = arith.constant 0 : index
    %8 = vector.load %arg9[%c0_6, %c0_7, %c0_8, %c0_9] : memref<1x4x8x8xf32, #tpu.memory_space<vmem>>, vector<1x1x8x8xf32>
    %9 = vector.shape_cast %8 : vector<1x1x8x8xf32> to vector<8x8xf32>
    %10 = vector.shape_cast %7 : vector<8x8xf32> to vector<1x1x8x8xf32>
    tpu.vector_store %arg9[%c0_6, %c0_7, %c0_8, %c0_9], %10 {strides = array<i32>} : memref<1x4x8x8xf32, #tpu.memory_space<vmem>>, vector<1x1x8x8xf32>,
    %11 = vector.extract_strided_slice %6 {offsets = [0, 8], sizes = [8, 8], strides = [1, 1]} : vector<8x32xf32> to vector<8x8xf32>
    %c0_10 = arith.constant 0 : index
    %c1 = arith.constant 1 : index
    %c0_11 = arith.constant 0 : index
    %c0_12 = arith.constant 0 : index
    %12 = vector.load %arg9[%c0_10, %c1, %c0_11, %c0_12] : memref<1x4x8x8xf32, #tpu.memory_space<vmem>>, vector<1x1x8x8xf32>
    %13 = vector.shape_cast %12 : vector<1x1x8x8xf32> to vector<8x8xf32>
    %14 = vector.shape_cast %11 : vector<8x8xf32> to vector<1x1x8x8xf32>
    tpu.vector_store %arg9[%c0_10, %c1, %c0_11, %c0_12], %14 {strides = array<i32>} : memref<1x4x8x8xf32, #tpu.memory_space<vmem>>, vector<1x1x8x8xf32>,
    %15 = vector.extract_strided_slice %6 {offsets = [0, 16], sizes = [8, 8], strides = [1, 1]} : vector<8x32xf32> to vector<8x8xf32>
    %c0_13 = arith.constant 0 : index
    %c2 = arith.constant 2 : index
    %c0_14 = arith.constant 0 : index
    %c0_15 = arith.constant 0 : index
    %16 = vector.load %arg9[%c0_13, %c2, %c0_14, %c0_15] : memref<1x4x8x8xf32, #tpu.memory_space<vmem>>, vector<1x1x8x8xf32>
    %17 = vector.shape_cast %16 : vector<1x1x8x8xf32> to vector<8x8xf32>
    %18 = vector.shape_cast %15 : vector<8x8xf32> to vector<1x1x8x8xf32>
    tpu.vector_store %arg9[%c0_13, %c2, %c0_14, %c0_15], %18 {strides = array<i32>} : memref<1x4x8x8xf32, #tpu.memory_space<vmem>>, vector<1x1x8x8xf32>,
    %19 = vector.extract_strided_slice %6 {offsets = [0, 24], sizes = [8, 8], strides = [1, 1]} : vector<8x32xf32> to vector<8x8xf32>
    %c0_16 = arith.constant 0 : index
    %c3 = arith.constant 3 : index
    %c0_17 = arith.constant 0 : index
    %c0_18 = arith.constant 0 : index
    %20 = vector.load %arg9[%c0_16, %c3, %c0_17, %c0_18] : memref<1x4x8x8xf32, #tpu.memory_space<vmem>>, vector<1x1x8x8xf32>
    %21 = vector.shape_cast %20 : vector<1x1x8x8xf32> to vector<8x8xf32>
    %22 = vector.shape_cast %19 : vector<8x8xf32> to vector<1x1x8x8xf32>
    tpu.vector_store %arg9[%c0_16, %c3, %c0_17, %c0_18], %22 {strides = array<i32>} : memref<1x4x8x8xf32, #tpu.memory_space<vmem>>, vector<1x1x8x8xf32>,
    %c0_19 = arith.constant 0 : index
    %c0_20 = arith.constant 0 : index
    %23 = vector.load %arg4[%c0_19, %c0_20] : memref<32x32xf32, #tpu.memory_space<vmem>>, vector<32x32xf32>
    %cst_21 = arith.constant dense<0.000000e+00> : vector<8x32xf32>
    %24 = tpu.matmul %1, %23, %cst_21 {dimension_numbers = #tpu.dot_dimension_numbers<[1], [0], [0], [1], [0, 0, 1, 1], [], []>} : vector<8x32xf32>, vector<32x32xf32>, vector<8x32xf32> -> vector<8x32xf32>
    %c0_22 = arith.constant 0 : index
    %c0_23 = arith.constant 0 : index
    %25 = vector.load %arg7[%c0_22, %c0_23] : memref<1x32xf32, #tpu.memory_space<vmem>>, vector<1x32xf32>
    %26 = vector.broadcast %25 : vector<1x32xf32> to vector<8x32xf32>
    %27 = arith.addf %24, %26 : vector<8x32xf32>
    %28 = vector.extract_strided_slice %27 {offsets = [0, 0], sizes = [8, 8], strides = [1, 1]} : vector<8x32xf32> to vector<8x8xf32>
    %c0_24 = arith.constant 0 : index
    %c0_25 = arith.constant 0 : index
    %c0_26 = arith.constant 0 : index
    %c0_27 = arith.constant 0 : index
    %29 = vector.load %arg10[%c0_24, %c0_25, %c0_26, %c0_27] : memref<1x4x8x8xf32, #tpu.memory_space<vmem>>, vector<1x1x8x8xf32>
    %30 = vector.shape_cast %29 : vector<1x1x8x8xf32> to vector<8x8xf32>
    %31 = vector.shape_cast %28 : vector<8x8xf32> to vector<1x1x8x8xf32>
    tpu.vector_store %arg10[%c0_24, %c0_25, %c0_26, %c0_27], %31 {strides = array<i32>} : memref<1x4x8x8xf32, #tpu.memory_space<vmem>>, vector<1x1x8x8xf32>,
    %32 = vector.extract_strided_slice %27 {offsets = [0, 8], sizes = [8, 8], strides = [1, 1]} : vector<8x32xf32> to vector<8x8xf32>
    %c0_28 = arith.constant 0 : index
    %c1_29 = arith.constant 1 : index
    %c0_30 = arith.constant 0 : index
    %c0_31 = arith.constant 0 : index
    %33 = vector.load %arg10[%c0_28, %c1_29, %c0_30, %c0_31] : memref<1x4x8x8xf32, #tpu.memory_space<vmem>>, vector<1x1x8x8xf32>
    %34 = vector.shape_cast %33 : vector<1x1x8x8xf32> to vector<8x8xf32>
    %35 = vector.shape_cast %32 : vector<8x8xf32> to vector<1x1x8x8xf32>
    tpu.vector_store %arg10[%c0_28, %c1_29, %c0_30, %c0_31], %35 {strides = array<i32>} : memref<1x4x8x8xf32, #tpu.memory_space<vmem>>, vector<1x1x8x8xf32>,
    %36 = vector.extract_strided_slice %27 {offsets = [0, 16], sizes = [8, 8], strides = [1, 1]} : vector<8x32xf32> to vector<8x8xf32>
    %c0_32 = arith.constant 0 : index
    %c2_33 = arith.constant 2 : index
    %c0_34 = arith.constant 0 : index
    %c0_35 = arith.constant 0 : index
    %37 = vector.load %arg10[%c0_32, %c2_33, %c0_34, %c0_35] : memref<1x4x8x8xf32, #tpu.memory_space<vmem>>, vector<1x1x8x8xf32>
    %38 = vector.shape_cast %37 : vector<1x1x8x8xf32> to vector<8x8xf32>
    %39 = vector.shape_cast %36 : vector<8x8xf32> to vector<1x1x8x8xf32>
    tpu.vector_store %arg10[%c0_32, %c2_33, %c0_34, %c0_35], %39 {strides = array<i32>} : memref<1x4x8x8xf32, #tpu.memory_space<vmem>>, vector<1x1x8x8xf32>,
    %40 = vector.extract_strided_slice %27 {offsets = [0, 24], sizes = [8, 8], strides = [1, 1]} : vector<8x32xf32> to vector<8x8xf32>
    %c0_36 = arith.constant 0 : index
    %c3_37 = arith.constant 3 : index
    %c0_38 = arith.constant 0 : index
    %c0_39 = arith.constant 0 : index
    %41 = vector.load %arg10[%c0_36, %c3_37, %c0_38, %c0_39] : memref<1x4x8x8xf32, #tpu.memory_space<vmem>>, vector<1x1x8x8xf32>
    %42 = vector.shape_cast %41 : vector<1x1x8x8xf32> to vector<8x8xf32>
    %43 = vector.shape_cast %40 : vector<8x8xf32> to vector<1x1x8x8xf32>
    tpu.vector_store %arg10[%c0_36, %c3_37, %c0_38, %c0_39], %43 {strides = array<i32>} : memref<1x4x8x8xf32, #tpu.memory_space<vmem>>, vector<1x1x8x8xf32>,
    %c0_40 = arith.constant 0 : index
    %c0_41 = arith.constant 0 : index
    %44 = vector.load %arg5[%c0_40, %c0_41] : memref<32x32xf32, #tpu.memory_space<vmem>>, vector<32x32xf32>
    %cst_42 = arith.constant dense<0.000000e+00> : vector<8x32xf32>
    %45 = tpu.matmul %1, %44, %cst_42 {dimension_numbers = #tpu.dot_dimension_numbers<[1], [0], [0], [1], [0, 0, 1, 1], [], []>} : vector<8x32xf32>, vector<32x32xf32>, vector<8x32xf32> -> vector<8x32xf32>
    %c0_43 = arith.constant 0 : index
    %c0_44 = arith.constant 0 : index
    %46 = vector.load %arg8[%c0_43, %c0_44] : memref<1x32xf32, #tpu.memory_space<vmem>>, vector<1x32xf32>
    %47 = vector.broadcast %46 : vector<1x32xf32> to vector<8x32xf32>
    %48 = arith.addf %45, %47 : vector<8x32xf32>
    %49 = vector.extract_strided_slice %48 {offsets = [0, 0], sizes = [8, 8], strides = [1, 1]} : vector<8x32xf32> to vector<8x8xf32>
    %c0_45 = arith.constant 0 : index
    %c0_46 = arith.constant 0 : index
    %c0_47 = arith.constant 0 : index
    %c0_48 = arith.constant 0 : index
    %50 = vector.load %arg11[%c0_45, %c0_46, %c0_47, %c0_48] : memref<1x4x8x8xf32, #tpu.memory_space<vmem>>, vector<1x1x8x8xf32>
    %51 = vector.shape_cast %50 : vector<1x1x8x8xf32> to vector<8x8xf32>
    %52 = vector.shape_cast %49 : vector<8x8xf32> to vector<1x1x8x8xf32>
    tpu.vector_store %arg11[%c0_45, %c0_46, %c0_47, %c0_48], %52 {strides = array<i32>} : memref<1x4x8x8xf32, #tpu.memory_space<vmem>>, vector<1x1x8x8xf32>,
    %53 = vector.extract_strided_slice %48 {offsets = [0, 8], sizes = [8, 8], strides = [1, 1]} : vector<8x32xf32> to vector<8x8xf32>
    %c0_49 = arith.constant 0 : index
    %c1_50 = arith.constant 1 : index
    %c0_51 = arith.constant 0 : index
    %c0_52 = arith.constant 0 : index
    %54 = vector.load %arg11[%c0_49, %c1_50, %c0_51, %c0_52] : memref<1x4x8x8xf32, #tpu.memory_space<vmem>>, vector<1x1x8x8xf32>
    %55 = vector.shape_cast %54 : vector<1x1x8x8xf32> to vector<8x8xf32>
    %56 = vector.shape_cast %53 : vector<8x8xf32> to vector<1x1x8x8xf32>
    tpu.vector_store %arg11[%c0_49, %c1_50, %c0_51, %c0_52], %56 {strides = array<i32>} : memref<1x4x8x8xf32, #tpu.memory_space<vmem>>, vector<1x1x8x8xf32>,
    %57 = vector.extract_strided_slice %48 {offsets = [0, 16], sizes = [8, 8], strides = [1, 1]} : vector<8x32xf32> to vector<8x8xf32>
    %c0_53 = arith.constant 0 : index
    %c2_54 = arith.constant 2 : index
    %c0_55 = arith.constant 0 : index
    %c0_56 = arith.constant 0 : index
    %58 = vector.load %arg11[%c0_53, %c2_54, %c0_55, %c0_56] : memref<1x4x8x8xf32, #tpu.memory_space<vmem>>, vector<1x1x8x8xf32>
    %59 = vector.shape_cast %58 : vector<1x1x8x8xf32> to vector<8x8xf32>
    %60 = vector.shape_cast %57 : vector<8x8xf32> to vector<1x1x8x8xf32>
    tpu.vector_store %arg11[%c0_53, %c2_54, %c0_55, %c0_56], %60 {strides = array<i32>} : memref<1x4x8x8xf32, #tpu.memory_space<vmem>>, vector<1x1x8x8xf32>,
    %61 = vector.extract_strided_slice %48 {offsets = [0, 24], sizes = [8, 8], strides = [1, 1]} : vector<8x32xf32> to vector<8x8xf32>
    %c0_57 = arith.constant 0 : index
    %c3_58 = arith.constant 3 : index
    %c0_59 = arith.constant 0 : index
    %c0_60 = arith.constant 0 : index
    %62 = vector.load %arg11[%c0_57, %c3_58, %c0_59, %c0_60] : memref<1x4x8x8xf32, #tpu.memory_space<vmem>>, vector<1x1x8x8xf32>
    %63 = vector.shape_cast %62 : vector<1x1x8x8xf32> to vector<8x8xf32>
    %64 = vector.shape_cast %61 : vector<8x8xf32> to vector<1x1x8x8xf32>
    tpu.vector_store %arg11[%c0_57, %c3_58, %c0_59, %c0_60], %64 {strides = array<i32>} : memref<1x4x8x8xf32, #tpu.memory_space<vmem>>, vector<1x1x8x8xf32>,
    return
  }
  func.func @transform_0(%arg0: i32, %arg1: i32) -> (i32, i32, i32) {
    %c0_i32 = arith.constant 0 : i32
    %c0_i32_0 = arith.constant 0 : i32
    return %arg0, %arg1, %c0_i32 : i32, i32, i32
  }
  func.func @transform_1(%arg0: i32, %arg1: i32) -> (i32, i32) {
    %c0_i32 = arith.constant 0 : i32
    %c0_i32_0 = arith.constant 0 : i32
    %c0_i32_1 = arith.constant 0 : i32
    return %c0_i32, %c0_i32_0 : i32, i32
  }
  func.func @transform_2(%arg0: i32, %arg1: i32) -> (i32, i32) {
    %c0_i32 = arith.constant 0 : i32
    %c0_i32_0 = arith.constant 0 : i32
    %c0_i32_1 = arith.constant 0 : i32
    return %c0_i32, %c0_i32_0 : i32, i32
  }
  func.func @transform_3(%arg0: i32, %arg1: i32) -> (i32, i32) {
    %c0_i32 = arith.constant 0 : i32
    %c0_i32_0 = arith.constant 0 : i32
    %c0_i32_1 = arith.constant 0 : i32
    return %c0_i32, %c0_i32_0 : i32, i32
  }
  func.func @transform_4(%arg0: i32, %arg1: i32) -> (i32, i32) {
    %c0_i32 = arith.constant 0 : i32
    %c0_i32_0 = arith.constant 0 : i32
    %c0_i32_1 = arith.constant 0 : i32
    return %c0_i32, %c0_i32_0 : i32, i32
  }
  func.func @transform_5(%arg0: i32, %arg1: i32) -> (i32, i32) {
    %c0_i32 = arith.constant 0 : i32
    %c0_i32_0 = arith.constant 0 : i32
    %c0_i32_1 = arith.constant 0 : i32
    return %c0_i32, %c0_i32_0 : i32, i32
  }
  func.func @transform_6(%arg0: i32, %arg1: i32) -> (i32, i32) {
    %c0_i32 = arith.constant 0 : i32
    %c0_i32_0 = arith.constant 0 : i32
    %c0_i32_1 = arith.constant 0 : i32
    return %c0_i32, %c0_i32_0 : i32, i32
  }
  func.func @transform_7(%arg0: i32, %arg1: i32) -> (i32, i32, i32, i32) {
    %c0_i32 = arith.constant 0 : i32
    %c0_i32_0 = arith.constant 0 : i32
    %c0_i32_1 = arith.constant 0 : i32
    return %arg0, %c0_i32, %arg1, %c0_i32_0 : i32, i32, i32, i32
  }
  func.func @transform_8(%arg0: i32, %arg1: i32) -> (i32, i32, i32, i32) {
    %c0_i32 = arith.constant 0 : i32
    %c0_i32_0 = arith.constant 0 : i32
    %c0_i32_1 = arith.constant 0 : i32
    return %arg0, %c0_i32, %arg1, %c0_i32_0 : i32, i32, i32, i32
  }
  func.func @transform_9(%arg0: i32, %arg1: i32) -> (i32, i32, i32, i32) {
    %c0_i32 = arith.constant 0 : i32
    %c0_i32_0 = arith.constant 0 : i32
    %c0_i32_1 = arith.constant 0 : i32
    return %arg0, %c0_i32, %arg1, %c0_i32_0 : i32, i32, i32, i32
  }
}

</mosaic_0001>

<bundles_post_ra>
// kernel: tpu_custom_call.1
= control target key start
LH: loop header
LB: loop body
LE: loop exit
PB: predicated region body
PF: predicated region fallthrough
CT: control target
= control target key end

     0   :  { %s1936_s0 = inlined_call_operand.hbm [shape: f32[2,8,32], index: 0, kind: input, shape index: {}]   ;;  %s1937_s1 = inlined_call_operand.hbm [shape: f32[32,32], index: 1, kind: input, shape index: {}]   ;;  %s1938_s2 = inlined_call_operand.hbm [shape: f32[32,32], index: 2, kind: input, shape index: {}]   ;;  %s1939_s3 = inlined_call_operand.hbm [shape: f32[32,32], index: 3, kind: input, shape index: {}]   ;;  %s1940_s4 = inlined_call_operand.vmem [shape: f32[1,32], index: 4, kind: input, shape index: {}]   ;;  %s1941_s5 = inlined_call_operand.vmem [shape: f32[1,32], index: 5, kind: input, shape index: {}]   ;;  %s1942_s6 = inlined_call_operand.vmem [shape: f32[1,32], index: 6, kind: input, shape index: {}]   ;;  %s1943_s7 = inlined_call_operand.hbm [shape: f32[2,4,8,8], index: 7, kind: output, shape index: {0}]   ;;  %s1944_s8 = inlined_call_operand.hbm [shape: f32[2,4,8,8], index: 8, kind: output, shape index: {1}]   ;;  %s1945_s9 = inlined_call_operand.hbm [shape: f32[2,4,8,8], index: 9, kind: output, shape index: {2}]  }
   0x1   :  { %1955 = sst [smem:[#allocation21_spill]] %s1936_s0 }
   0x2   :  { %1956 = sst [smem:[#allocation22_spill]] %s1937_s1 }
   0x3   :  { %1957 = sst [smem:[#allocation23_spill]] %s1943_s7 }
   0x4   :  { %1958 = sst [smem:[#allocation24_spill]] %s1944_s8 }
   0x5   :  { %1959 = sst [smem:[#allocation25_spill]] %s1945_s9 }
   0x6   :  { %15 = vsyncpa [#allocation3], 0 }
   0x7   :  { %17 = vsyncpa [#allocation3 + $0x1], 0 }
   0x8   :  { %18 = vsyncpa [#allocation6], 0 }
   0x9   :  { %19 = vsyncpa [#allocation9], 0 }
   0xa   :  { %20 = vsyncpa [#allocation4], 0 }
   0xb   :  { %22 = vsyncpa [#allocation4 + $0x1], 0 }
   0xc   :  { %23 = vsyncpa [#allocation12], 0 }
   0xd   :  { %25 = vsyncpa [#allocation12 + $0x1], 0  ;;  %s1526_s30 = smov 0   ;;  %s1528_s10 = smov 0  }
   0xe   :  { %s1530_s11 = smov 0   ;;  %s1532_s12 = smov 0  }
   0xf   :  { %s1534_s13 = smov 0   ;;  %s1536_s14 = smov 0  }
  0x10 LB: > { %1960 = sst [smem:[#allocation19_spill]] %s1437_s30  ;;  %s1557_s15 = sadd.s32 4294967295, %s1457_s14   ;;  %s1457_s14 = sphi %s1536_s14, %s31_s14   ;;  %s1453_s13 = sphi %s1534_s13, %s1990_s13   ;;  %s1449_s12 = sphi %s1532_s12, %s1989_s12   ;;  %s1445_s11 = sphi %s1530_s11, %s1988_s11   ;;  %s1441_s10 = sphi %s1528_s10, %s1987_s10   ;;  %s1437_s30 = sphi %s1526_s30, %s1986_s30  }
  0x11   : > { %s1946_s16 = sadd.s32 4294967294, %s1457_s14   ;;  %p65_p0 = scmp.ne.s32.totalorder %s1441_s10, %s1437_s30 }
  0x12   : > { %p1948_p1 = scmp.eq.s32.totalorder %s1557_s15, 0  ;;  %p223_p3 = scmp.eq.s32.totalorder %s1946_s16, 1 }
  0x13   : > { %p970_p5 = scmp.ge.s32.totalorder %s1457_s14, 1  ;;  %p286_p7 = scmp.lt.s32.totalorder %s1457_s14, 3 }
  0x14   : > { %p1568_p4 = por %p1948_p1, %p65_p0  ;;  %p1573_p6 = por %p223_p3, %p65_p0 }
  0x15   : > { %p1578_p8 = pnand %p970_p5, %p286_p7  ;;  %s1459_s20 = smov [#allocation5]  }
  0x16   : > { %s1961_s17 = scalar_select %p1568_p4, 1, 0 }
  0x17   : > { %s1962_s18 = scalar_select %p1573_p6, 1, 0 }
  0x18   : > { %s1964_s19 = scalar_select %p1578_p8, 1, 0 }
  0x19   : > { %1963 = sst [smem:[#allocation20_spill]] %s1962_s18  ;;  %s298_s21 = sshll.u32 %s1459_s20, 4  ;;  %s1582_s21 = int_to_ptr.vmem [resolvable:$true] %s298_s21 }
  0x1a   : > { %p1100_p9 = pneg %p1578_p8  ;;  %s1460_s23 = smov [#allocation7]  }
  0x1b   : > { %s311_s24 = sshll.u32 %s1460_s23, 4  ;;  %s1461_s25 = smov [#allocation8]   ;;  %s1593_s24 = int_to_ptr.vmem [resolvable:$true] %s311_s24 }
  0x1c   : > { %p1589_p11 = pnand %p1100_p9, %p1948_p1  ;;  %s1595_s26 = sshll.u32 %s1461_s25, 4  ;;  %s325_s26 = int_to_ptr.vmem [resolvable:$true] %s1595_s26 }
  0x1d   : > { %s1966_s1 = sld [smem:[#allocation22_spill]] }
  0x1e   : > { %p1605_p13 = pneg %p1589_p11 }
  0x23   : > { %s1193_s29 = scalar_lea.hbm %s1966_s1, 512 }
  0x24   : > { %p1194_p12 = scmp.ne.s32.totalorder %s1966_s1, %s1193_s29  ;;  %p1200_p5 = scmp.lt.u32.totalorder %s1193_s29, %s1966_s1 }
  0x26   : > { %p1196_p0 = pnand %p1605_p13, %p1194_p12 }
  0x28   : > { %p1197_p3 = pneg %p1196_p0 }
  0x2a   : > { %p1202_p7 = pnand %p1200_p5, %p1197_p3 }
  0x2c   : > { %1205 = shalt.err (!%p1202_p7)
}
  0x2d   : > { %s1206_s16 = scalar_lea.vmem %s1582_s21, 512  ;;  %p1214_p2 = scmp.lt.s32.totalorder %s1582_s21, %s1582_s21 }
  0x2e   : > { %p1207_p9 = scmp.ne.s32.totalorder %s1582_s21, %s1206_s16  ;;  %p1215_p6 = scmp.lt.s32.totalorder %s1206_s16, %s1206_s16 }
  0x30   : > { %p1209_p10 = pnand %p1207_p9, %p1605_p13  ;;  %p1216_p12 = por %p1215_p6, %p1214_p2 }
  0x32   : > { %p1210_p1 = pneg %p1209_p10 }
  0x34   : > { %p1217_p0 = pnand %p1216_p12, %p1210_p1 }
  0x36   : > { %1220 = shalt.err (!%p1217_p0)
}
  0x37   : > { %s1462_s27 = smov 128   ;;  %s1463_s28 = smov 8  }
  0x38   : > { %1103 = dma.hbm_to_vmem [thread:$0]  (!%p1589_p11), %s1966_s1, 512, %s1582_s21, [#allocation6], %s1462_s27, %s1462_s27, %s1463_s28  }
  0x39   : > { %s1221_s16 = scalar_lea.hbm %s1938_s2, 512 }
  0x3a   : > { %p1222_p1 = scmp.ne.s32.totalorder %s1938_s2, %s1221_s16  ;;  %p1228_p10 = scmp.lt.u32.totalorder %s1221_s16, %s1938_s2 }
  0x3c   : > { %p1224_p2 = pnand %p1222_p1, %p1605_p13 }
  0x3e   : > { %p1225_p6 = pneg %p1224_p2 }
  0x40   : > { %p1230_p3 = pnand %p1228_p10, %p1225_p6 }
  0x42   : > { %1233 = shalt.err (!%p1230_p3)
}
  0x43   : > { %s1234_s21 = scalar_lea.vmem %s1593_s24, 512  ;;  %p1242_p12 = scmp.lt.s32.totalorder %s1593_s24, %s1593_s24 }
  0x44   : > { %p1235_p5 = scmp.ne.s32.totalorder %s1593_s24, %s1234_s21  ;;  %p1243_p0 = scmp.lt.s32.totalorder %s1234_s21, %s1234_s21 }
  0x46   : > { %p1237_p7 = pnand %p1235_p5, %p1605_p13  ;;  %p1244_p1 = por %p1243_p0, %p1242_p12 }
  0x48   : > { %p1238_p9 = pneg %p1237_p7 }
  0x4a   : > { %p1245_p2 = pnand %p1244_p1, %p1238_p9 }
  0x4c   : > { %1248 = shalt.err (!%p1245_p2)
}
  0x4d   : > { %1106 = dma.hbm_to_vmem [thread:$0]  (!%p1589_p11), %s1938_s2, 512, %s1593_s24, [#allocation6], %s1462_s27, %s1462_s27, %s1463_s28  }
  0x4e   : > { %s1249_s29 = scalar_lea.hbm %s1939_s3, 512 }
  0x4f   : > { %p1250_p6 = scmp.ne.s32.totalorder %s1939_s3, %s1249_s29  ;;  %p1256_p5 = scmp.lt.u32.totalorder %s1249_s29, %s1939_s3 }
  0x51   : > { %p1252_p10 = pnand %p1250_p6, %p1605_p13 }
  0x53   : > { %p1253_p3 = pneg %p1252_p10 }
  0x55   : > { %p1258_p7 = pnand %p1256_p5, %p1253_p3 }
  0x57   : > { %1261 = shalt.err (!%p1258_p7)
}
  0x58   : > { %s1262_s21 = scalar_lea.vmem %s325_s26, 512  ;;  %p1270_p1 = scmp.lt.s32.totalorder %s325_s26, %s325_s26 }
  0x59   : > { %p1263_p9 = scmp.ne.s32.totalorder %s325_s26, %s1262_s21  ;;  %p1271_p2 = scmp.lt.s32.totalorder %s1262_s21, %s1262_s21 }
  0x5b   : > { %p1265_p12 = pnand %p1263_p9, %p1605_p13  ;;  %p1272_p4 = por %p1271_p2, %p1270_p1 }
  0x5d   : > { %p1266_p0 = pneg %p1265_p12 }
  0x5f   : > { %p1273_p8 = pnand %p1272_p4, %p1266_p0 }
  0x61   : > { %1276 = shalt.err (!%p1273_p8)
}
  0x62   : > { %1109 = dma.hbm_to_vmem [thread:$0]  (!%p1589_p11), %s1939_s3, 512, %s325_s26, [#allocation9], %s1462_s27, %s1462_s27, %s1463_s28  }
  0x63   : > { %s52_s18 = sadd.s32 1, %s1445_s11  ;;  %s43_s22 = sadd.s32 1, %s1453_s13 }
  0x64   : > { %p59_p4 = scmp.ne.s32.totalorder %s1445_s11, %s1441_s10  ;;  %p45_p8 = scmp.ge.s32.totalorder %s43_s22, 2 }
  0x65   : > { %p60_p13 = scmp.eq.s32.totalorder %s1457_s14, 0  ;;  %p1968_p6 = scmp.eq.s32.totalorder %s1557_s15, 1 }
  0x66   : > { %p1127_p3 = scmp.lt.s32.totalorder %s1457_s14, 2  ;;  %s1992_s22 = smov (%p45_p8, %s43_s22), 0 }
  0x67   : > { %p1684_p10 = por %p1968_p6, %p59_p4  ;;  %p61_p5 = por %p60_p13, %p59_p4 }
  0x68   : > { %s347_s9 = sand.u32 1, %s1445_s11   ;;  %s47_s30 = ssub.s32 %s1453_s13, %s1992_s22 }
  0x69   : > { %p50_p7 = scmp.eq.s32.totalorder %s47_s30, 0  ;;  %s975_s26 = sshll.u32 %s347_s9, 3 }
  0x6a   : > { %s976_s27 = sshll.u32 %s1453_s13, 7  ;;  %s1970_s0 = sld [smem:[#allocation21_spill]] }
  0x6b   : > { %s1696_s28 = scalar_select %p50_p7, %s1445_s11, %s52_s18  }
  0x6c   : > { %s351_s25 = scalar_lea.vmem [#allocation2], %s975_s26  ;;  %p1707_p11 = pnand %p1127_p3, %p61_p5 }
  0x6d   : > { %s359_s16 = sshll.u32 %s351_s25, 4  ;;  %s348_s24 = scalar_lea.sflag [#allocation3], %s347_s9  ;;  %s1703_s16 = int_to_ptr.vmem [resolvable:$true] %s359_s16 }
  0x6e   : > { %p1279_p12 = pneg %p1707_p11 }
  0x70   : > { %s1701_s23 = scalar_lea.hbm %s1970_s0, %s976_s27  ;;  %s1282_s26 = scalar_lea.hbm %s1970_s0, 256 }
  0x71   : > { %s1277_s7 = scalar_lea.hbm %s1701_s23, 128  ;;  %p1283_p2 = scmp.lt.u32.totalorder %s1701_s23, %s1970_s0 }
  0x72   : > { %p1278_p9 = scmp.ne.s32.totalorder %s1701_s23, %s1277_s7  ;;  %p1284_p4 = scmp.lt.u32.totalorder %s1282_s26, %s1277_s7 }
  0x73   : > { %p1286_p13 = scmp.lt.u32.totalorder %s1277_s7, %s1701_s23 }
  0x74   : > { %p1280_p0 = pnand %p1279_p12, %p1278_p9  ;;  %p1285_p8 = por %p1284_p4, %p1283_p2 }
  0x76   : > { %p1281_p1 = pneg %p1280_p0  ;;  %p1287_p6 = por %p1286_p13, %p1285_p8 }
  0x78   : > { %p1288_p3 = pnand %p1287_p6, %p1281_p1 }
  0x7a   : > { %1291 = shalt.err (!%p1288_p3)
}
  0x7b   : > { %s1292_s9 = scalar_lea.vmem %s1703_s16, 128  ;;  %s1464_s20 = smov [#allocation2]  }
  0x7c   : > { %p1293_p5 = scmp.ne.s32.totalorder %s1703_s16, %s1292_s9  ;;  %s1297_s25 = sshll.u32 %s1464_s20, 4  ;;  %s1298_s25 = int_to_ptr.vmem [resolvable:$false] %s1297_s25 }
  0x7d   : > { %s1299_s18 = scalar_lea.vmem %s1298_s25, 256  ;;  %p1300_p0 = scmp.lt.s32.totalorder %s1703_s16, %s1298_s25 }
  0x7e   : > { %p1295_p7 = pnand %p1293_p5, %p1279_p12  ;;  %p1301_p2 = scmp.lt.s32.totalorder %s1299_s18, %s1292_s9 }
  0x80   : > { %p1296_p9 = pneg %p1295_p7  ;;  %p1302_p4 = por %p1301_p2, %p1300_p0 }
  0x82   : > { %p1303_p8 = pnand %p1302_p4, %p1296_p9 }
  0x84   : > { %1306 = shalt.err (!%p1303_p8)
}
  0x85   : > { %1113 = dma.hbm_to_vmem [thread:$0]  (!%p1707_p11), %s1701_s23, 128, %s1703_s16, %s348_s24  }
  0x86   : > { %p1972_p1 = scmp.ne.s32.totalorder %s1964_s19, 0 }
  0x87   : > { %s1739_s7 = sand.u32 (!%p1972_p1), 1, %s1441_s10   ;;  %p1973_p12 = scmp.ne.s32.totalorder (!%p1972_p1), %s1961_s17, 0 }
  0x88   : > { %368 = sbr.rel (%p1972_p1) target bundleno = 556 (0x22c), region = 48  ;;  %s978_s30 = sshll.u32 (!%p1972_p1), %s1739_s7, 3 }
  0x89   : > { %s371_s26 = scalar_lea.sflag (!%p1972_p1), [#allocation3], %s1739_s7  ;;  %s1743_s27 = scalar_lea.vmem (!%p1972_p1), [#allocation2], %s978_s30 }
  0x8f   : > { %1416 = dma.done.wait (%p1973_p12), %s371_s26, 128  }
  0x90   : > { %1418 = vsyncadd (%p1973_p12), %s371_s26, 4294967168  ;;  %p1974_p11 = scmp.eq.s32.totalorder %s1557_s15, 0 }
  0x92   : > { %1420 = dma.done.wait (%p1974_p11), [#allocation6], 1024   ;;  %p1975_p13 = pmov %p1974_p11 }
  0x93   : > { %p1976_p6 = pmov %p1974_p11 }
  0x94   : > { %1422 = vsyncadd (%p1975_p13), [#allocation6], 4294966272 }
  0x95   : > { %1424 = dma.done.wait (%p1976_p6), [#allocation9], 512   ;;  %p1977_p3 = pmov %p1976_p6 }
  0x96   : > { %v1465_v0 = vmov 0.0|0.0   ;;  %vm1466_vm0 = vmmov 0   ;;  %v1467_v1 = vmov 0.0   ;;  %v535_v2 = vld [vmem:[#allocation7] sm:$0xff]  ;;  %v536_v3 = vld [vmem:[#allocation7 + $0x8] sm:$0xff]  ;;  %v537_v7 = vld [vmem:[#allocation7 + $0x10] sm:$0xff] }
  0x97   : > { %1426 = vsyncadd (%p1977_p3), [#allocation9], 4294966784  ;;  %1068 = vmatprep.subr.bf16.mxu1 %v1465_v0  ;;  %1062 = vmatprep.subr.bf16.mxu0 %v1465_v0  ;;  %v432_v4 = vld [vmem:[#allocation5] sm:$0xff]  ;;  %v1069_v5 = vpack.c.bf16 %v536_v3, %v535_v2  ;;  %v433_v6 = vld [vmem:[#allocation5 + $0x8] sm:$0xff]  ;;  %vm443_vm1 = vcmask 261120   ;;  %s982_s17 = sshll.u32 %s1739_s7, 5 }
  0x98   : > { %1048 = vmatprep.mubr.msk.f32.mxu1 %vm1466_vm0, %v1467_v1  ;;  %1037 = vmatprep.mubr.msk.f32.mxu0 %vm1466_vm0, %v1467_v1  ;;  %v538_v8 = vld [vmem:[#allocation7 + $0x18] sm:$0xff]  ;;  %v1063_v9 = vpack.c.bf16 %v433_v6, %v432_v4  ;;  %v434_v10 = vld [vmem:[#allocation5 + $0x10] sm:$0xff]  ;;  %v633_v14 = vld [vmem:[#allocation8] sm:$0xff]  ;;  %vm517_vm2 = vcmask 64512   ;;  %s1768_s24 = scalar_lea.vmem [#allocation11], %s982_s17  ;;  %s1468_s29 = smov 104  }
  0x99   : > { %v435_v11 = vld [vmem:[#allocation5 + $0x18] sm:$0xff]  ;;  %1070 = vmatpush3.bf16.msra.mxu1 %v1069_v5  ;;  %v1072_v12 = vpack.c.bf16 %v538_v8, %v537_v7  ;;  %v634_v15 = vld [vmem:[#allocation8 + $0x8] sm:$0xff]  ;;  %v635_v18 = vld [vmem:[#allocation8 + $0x10] sm:$0xff]  ;;  %s1469_s9 = smov 120   ;;  %s1772_s20 = scalar_lea.vmem [#allocation10], %s982_s17 }
  0x9a   : > { %1064 = vmatpush3.bf16.msra.mxu0 %v1063_v9  ;;  %1071 = vmatprep.subr.bf16.mxu1 %v1465_v0  ;;  %v1066_v13 = vpack.c.bf16 %v435_v11, %v434_v10  ;;  %v431_v16 = vld [vmem:[%s1743_s27] sm:$0xff]  ;;  %v1075_v17 = vpack.c.bf16 %v634_v15, %v633_v14  ;;  %s1470_s25 = smov 112   ;;  %s1779_s26 = scalar_lea.vmem [#allocation13], %s982_s17 }
  0x9b   : > { %1065 = vmatprep.subr.bf16.mxu0 %v1465_v0  ;;  %v636_v19 = vld [vmem:[#allocation8 + $0x18] sm:$0xff]  ;;  %v990_v21 = vld [vmem:[%s1941_s5] ss:$0 sm:$0xff]  ;;  %s773_s27 = sshll.u32 %s1768_s24, 4  ;;  %s736_s19 = sand.u32 1, %s1557_s15   ;;  %s1788_s27 = int_to_ptr.vmem [resolvable:$true] %s773_s27 }
  0x9c   : > { %v1078_v20 = vpack.c.bf16 %v636_v19, %v635_v18  ;;  %v985_v22 = vld [vmem:[%s1940_s4] ss:$0 sm:$0xff]  ;;  %s1786_s23 = sshll.u32 %s1449_s12, 9  ;;  %s756_s17 = sshll.u32 %s1772_s20, 4  ;;  %s1801_s17 = int_to_ptr.vmem [resolvable:$true] %s756_s17 }
  0x9d   : > { %1073 = vmatpush3.bf16.msra.mxu1 %v1072_v12  ;;  %v995_v29 = vld [vmem:[%s1942_s6] ss:$0 sm:$0xff]  ;;  %s1807_s12 = scalar_lea.sflag [#allocation12], %s736_s19 }
  0x9e   : > { %1067 = vmatpush3.bf16.msra.mxu0 %v1066_v13 }
  0x9f   : > { %1074 = vmatprep.subr.bf16.mxu0 %v1465_v0 }
  0xa0   : > { %1049 = vmatmul.mubr.msk.f32.vlgmr.msra.gmra.mrb[0].mxu1 %vm443_vm1, %v431_v16 }
  0xa1   : > { %1038 = vmatmul.mubr.msk.f32.vlgmr.msra.gmra.mrb[0].mxu0 %vm443_vm1, %v431_v16 }
  0xa2   : > { %1076 = vmatpush3.bf16.msra.mxu0 %v1075_v17  ;;  %1059 = vmatprep.mubr.msk.f32.mxu0 %vm1466_vm0, %v1467_v1 }
  0xa3   : > { %1077 = vmatprep.subr.bf16.mxu0 %v1465_v0 }
  0xa6   : > { %1079 = vmatpush3.bf16.msra.mxu0 %v1078_v20 }
  0xa9   : > { %1060 = vmatmul.mubr.msk.f32.vlgmr.msra.gmra.mrb[2].mxu0 %vm443_vm1, %v431_v16 }
 0x173   : > { %v612_v23 = vpop.f32.mrb[0].mxu1 }
 0x174   : > { %v613_v24 = vadd.f32 %v990_v21, %v612_v23  ;;  %v1050_v25 = vpop.f32.mrb[1].mxu1  ;;  %v513_v26 = vpop.f32.mrb[0].mxu0 }
 0x175   : > { %v514_v27 = vadd.f32 %v985_v22, %v513_v26  ;;  %v1039_v28 = vpop.f32.mrb[1].mxu0 }
 0x176   : > { %616 = vst.msk [vmem:[%s1768_s24] sm:$0xff] %vm517_vm2, %v613_v24  ;;  %628 = vrot.lane.b32.xlu1 %v613_v24, %s1468_s29  ;;  %618 = vrot.lane.b32.xlu0 %v613_v24, %s1469_s9 }
 0x177   : > { %518 = vst.msk [vmem:[%s1772_s20] sm:$0xff] %vm517_vm2, %v514_v27 }
 0x17a   : > { %623 = vrot.lane.b32.xlu0 %v613_v24, %s1470_s25  ;;  %520 = vrot.lane.b32.xlu1 %v514_v27, %s1469_s9 }
 0x17c   : > { %v710_v30 = vpop.f32.mrb[2].mxu0 }
 0x17d   : > { %v711_v31 = vadd.f32 %v995_v29, %v710_v30  ;;  %v1061_v32 = vpop.f32.mrb[3].mxu0 }
 0x17e   : > { %525 = vrot.lane.b32.xlu0 %v514_v27, %s1470_s25  ;;  %530 = vrot.lane.b32.xlu1 %v514_v27, %s1468_s29 }
 0x17f   : > { %714 = vst.msk [vmem:[%s1779_s26] sm:$0xff] %vm517_vm2, %v711_v31 }
 0x182   : > { %721 = vrot.lane.b32.xlu1 %v711_v31, %s1470_s25  ;;  %716 = vrot.lane.b32.xlu0 %v711_v31, %s1469_s9  ;;  %s1307_s9 = scalar_lea.vmem %s1788_s27, 512  ;;  %s1471_s25 = smov [#allocation11]  }
 0x183   : > { %p1308_p5 = scmp.ne.s32.totalorder %s1788_s27, %s1307_s9  ;;  %s1311_s18 = sshll.u32 %s1471_s25, 4  ;;  %s1312_s18 = int_to_ptr.vmem [resolvable:$false] %s1311_s18 }
 0x184   : > { %s1313_s30 = scalar_lea.vmem %s1312_s18, 1024  ;;  %p1314_p0 = scmp.lt.s32.totalorder %s1788_s27, %s1312_s18 }
 0x185   : > { %p1309_p7 = pnand %p1308_p5, %p1684_p10  ;;  %p1315_p2 = scmp.lt.s32.totalorder %s1313_s30, %s1307_s9 }
 0x186   : > { %726 = vrot.lane.b32.xlu0 %v711_v31, %s1468_s29  ;;  %s1978_s29 = sld [smem:[#allocation24_spill]] }
 0x187   : > { %p1310_p9 = pneg %p1309_p7  ;;  %p1316_p4 = por %p1315_p2, %p1314_p0 }
 0x189   : > { %p1317_p8 = pnand %p1316_p4, %p1310_p9 }
 0x18c   : > { %s1799_s15 = scalar_lea.hbm %s1978_s29, %s1786_s23 }
 0x1e8   : > { %v629_v33 = vpop.permute.xlu1 %628  ;;  %v619_v34 = vpop.permute.xlu0 %618 }
 0x1e9   : > { %994 = vst.msk [vmem:[%s1768_s24 + $0x18] sm:$0xff] %vm517_vm2, %v629_v33  ;;  %992 = vst.msk [vmem:[%s1768_s24 + $0x8] sm:$0xff] %vm517_vm2, %v619_v34 }
 0x1ec   : > { %v624_v35 = vpop.permute.xlu0 %623  ;;  %v521_v36 = vpop.permute.xlu1 %520 }
 0x1ed   : > { %993 = vst.msk [vmem:[%s1768_s24 + $0x10] sm:$0xff] %vm517_vm2, %v624_v35  ;;  %987 = vst.msk [vmem:[%s1772_s20 + $0x8] sm:$0xff] %vm517_vm2, %v521_v36 }
 0x1ee   : > { %1320 = shalt.err (!%p1317_p8)
}
 0x1ef   : > { %s1321_s24 = scalar_lea.hbm %s1799_s15, 512  ;;  %s1325_s21 = scalar_lea.hbm %s1978_s29, 1024 }
 0x1f0   : > { %p1322_p1 = scmp.ne.s32.totalorder %s1799_s15, %s1321_s24  ;;  %p1326_p13 = scmp.lt.u32.totalorder %s1799_s15, %s1978_s29 }
 0x1f1   : > { %p1327_p6 = scmp.lt.u32.totalorder %s1325_s21, %s1321_s24  ;;  %p1329_p5 = scmp.lt.u32.totalorder %s1321_s24, %s1799_s15 }
 0x1f2   : > { %p1323_p12 = pnand %p1322_p1, %p1684_p10 }
 0x1f3   : > { %p1328_p3 = por %p1327_p6, %p1326_p13 }
 0x1f4   : > { %p1324_p11 = pneg %p1323_p12 }
 0x1f5   : > { %p1330_p7 = por %p1329_p5, %p1328_p3 }
 0x1f7   : > { %p1331_p9 = pnand %p1330_p7, %p1324_p11 }
 0x1f9   : > { %1334 = shalt.err (!%p1331_p9)
}
 0x1fa   : > { %s1472_s9 = smov 128   ;;  %s1473_s30 = smov 8   ;;  %v526_v37 = vpop.permute.xlu0 %525  ;;  %v531_v38 = vpop.permute.xlu1 %530 }
 0x1fb   : > { %1095 = dma.vmem_to_hbm [thread:$0]  (%p1684_p10), %s1788_s27, 512, %s1799_s15, %s1807_s12, %s1472_s9, %s1472_s9, %s1473_s30  }
 0x1fc   : > { %s1979_s16 = sld [smem:[#allocation23_spill]]  ;;  %988 = vst.msk [vmem:[%s1772_s20 + $0x10] sm:$0xff] %vm517_vm2, %v526_v37  ;;  %989 = vst.msk [vmem:[%s1772_s20 + $0x18] sm:$0xff] %vm517_vm2, %v531_v38  ;;  %s732_s25 = scalar_lea.sflag [#allocation4], %s1739_s7 }
 0x1fd   : > { %s1335_s18 = scalar_lea.vmem %s1801_s17, 512  ;;  %s1474_s0 = smov [#allocation10]  }
 0x1fe   : > { %p1336_p0 = scmp.ne.s32.totalorder %s1801_s17, %s1335_s18  ;;  %s1339_s1 = sshll.u32 %s1474_s0, 4  ;;  %s1340_s1 = int_to_ptr.vmem [resolvable:$false] %s1339_s1 }
 0x1ff   : > { %s1341_s27 = scalar_lea.vmem %s1340_s1, 1024  ;;  %p1342_p8 = scmp.lt.s32.totalorder %s1801_s17, %s1340_s1 }
 0x200   : > { %p1337_p2 = pnand %p1336_p0, %p1684_p10  ;;  %p1343_p1 = scmp.lt.s32.totalorder %s1341_s27, %s1335_s18 }
 0x202   : > { %s1838_s21 = scalar_lea.hbm %s1979_s16, %s1786_s23  ;;  %p1338_p4 = pneg %p1337_p2 }
 0x203   : > { %p1344_p12 = por %p1343_p1, %p1342_p8 }
 0x205   : > { %p1345_p11 = pnand %p1344_p12, %p1338_p4 }
 0x207   : > { %1348 = shalt.err (!%p1345_p11)
}
 0x208   : > { %s1349_s20 = scalar_lea.hbm %s1838_s21, 512  ;;  %s1353_s0 = scalar_lea.hbm %s1979_s16, 1024 }
 0x209   : > { %p1350_p13 = scmp.ne.s32.totalorder %s1838_s21, %s1349_s20  ;;  %p1354_p5 = scmp.lt.u32.totalorder %s1838_s21, %s1979_s16 }
 0x20a   : > { %p1355_p7 = scmp.lt.u32.totalorder %s1353_s0, %s1349_s20  ;;  %p1357_p0 = scmp.lt.u32.totalorder %s1349_s20, %s1838_s21 }
 0x20b   : > { %p1351_p6 = pnand %p1350_p13, %p1684_p10 }
 0x20c   : > { %p1356_p9 = por %p1355_p7, %p1354_p5 }
 0x20d   : > { %p1352_p3 = pneg %p1351_p6 }
 0x20e   : > { %p1358_p2 = por %p1357_p0, %p1356_p9 }
 0x210   : > { %p1359_p4 = pnand %p1358_p2, %p1352_p3 }
 0x212   : > { %1362 = shalt.err (!%p1359_p4)
}
 0x213   : > { %1094 = dma.vmem_to_hbm [thread:$0]  (%p1684_p10), %s1801_s17, 512, %s1838_s21, %s732_s25, %s1472_s9, %s1472_s9, %s1473_s30   ;;  %v722_v39 = vpop.permute.xlu1 %721  ;;  %v717_v40 = vpop.permute.xlu0 %716 }
 0x214   : > { %s790_s18 = sshll.u32 %s1779_s26, 4  ;;  %998 = vst.msk [vmem:[%s1779_s26 + $0x10] sm:$0xff] %vm517_vm2, %v722_v39  ;;  %997 = vst.msk [vmem:[%s1779_s26 + $0x8] sm:$0xff] %vm517_vm2, %v717_v40  ;;  %s1980_s20 = sld [smem:[#allocation25_spill]]  ;;  %s1876_s18 = int_to_ptr.vmem [resolvable:$true] %s790_s18 }
 0x215   : > { %s1363_s17 = scalar_lea.vmem %s1876_s18, 512  ;;  %s1475_s21 = smov [#allocation13]  }
 0x216   : > { %p1364_p8 = scmp.ne.s32.totalorder %s1876_s18, %s1363_s17  ;;  %s1367_s25 = sshll.u32 %s1475_s21, 4  ;;  %s1368_s25 = int_to_ptr.vmem [resolvable:$false] %s1367_s25 }
 0x217   : > { %v727_v41 = vpop.permute.xlu0 %726  ;;  %s1369_s24 = scalar_lea.vmem %s1368_s25, 1024  ;;  %p1370_p11 = scmp.lt.s32.totalorder %s1876_s18, %s1368_s25 }
 0x218   : > { %999 = vst.msk [vmem:[%s1779_s26 + $0x18] sm:$0xff] %vm517_vm2, %v727_v41  ;;  %p1365_p1 = pnand %p1364_p8, %p1684_p10  ;;  %p1371_p13 = scmp.lt.s32.totalorder %s1369_s24, %s1363_s17 }
 0x21a   : > { %s1882_s15 = scalar_lea.hbm %s1980_s20, %s1786_s23  ;;  %p1366_p12 = pneg %p1365_p1 }
 0x21b   : > { %p1372_p6 = por %p1371_p13, %p1370_p11 }
 0x21d   : > { %p1373_p3 = pnand %p1372_p6, %p1366_p12 }
 0x21f   : > { %1376 = shalt.err (!%p1373_p3)
}
 0x220   : > { %s1377_s26 = scalar_lea.hbm %s1882_s15, 512  ;;  %s1381_s19 = scalar_lea.hbm %s1980_s20, 1024 }
 0x221   : > { %p1378_p5 = scmp.ne.s32.totalorder %s1882_s15, %s1377_s26  ;;  %p1382_p0 = scmp.lt.u32.totalorder %s1882_s15, %s1980_s20 }
 0x222   : > { %p1383_p2 = scmp.lt.u32.totalorder %s1381_s19, %s1377_s26  ;;  %p1385_p8 = scmp.lt.u32.totalorder %s1377_s26, %s1882_s15 }
 0x223   : > { %p1379_p7 = pnand %p1378_p5, %p1684_p10 }
 0x224   : > { %p1384_p4 = por %p1383_p2, %p1382_p0 }
 0x225   : > { %p1380_p9 = pneg %p1379_p7 }
 0x226   : > { %p1386_p1 = por %p1385_p8, %p1384_p4 }
 0x228   : > { %p1387_p12 = pnand %p1386_p1, %p1380_p9 }
 0x22a   : > { %1390 = shalt.err (!%p1387_p12)
}
 0x22b   : > { %1096 = dma.vmem_to_hbm [thread:$0]  (%p1684_p10), %s1876_s18, 512, %s1882_s15, %s1807_s12, %s1472_s9, %s1472_s9, %s1473_s30  }
 0x22c PF: > { %s1981_s7 = sld [smem:[#allocation19_spill]]  ;;  %s1982_s17 = sld [smem:[#allocation20_spill]] }
 0x22d   : > { %p1984_p13 = scmp.ge.s32.totalorder %s1457_s14, 2 }
 0x232   : > { %s805_s21 = sand.u32 1, %s1981_s7   ;;  %p1983_p11 = scmp.ne.s32.totalorder %s1982_s17, 0 }
 0x233   : > { %s806_s25 = scalar_lea.sflag [#allocation4], %s805_s21 }
 0x234   : > { %p1115_p6 = pnand %p1984_p13, %p1983_p11 }
 0x236   : > { %1428 = dma.done.wait (!%p1115_p6), %s806_s25, 512  }
 0x237   : > { %1430 = vsyncadd (!%p1115_p6), %s806_s25, 4294966784  ;;  %s1985_s8 = sadd.s32 4294967294, %s1457_s14  }
 0x238   : > { %s814_s24 = sand.u32 1, %s1985_s8  }
 0x239   : > { %s815_s26 = scalar_lea.sflag [#allocation12], %s814_s24 }
 0x23a   : > { %1432 = dma.done.wait (!%p1115_p6), %s815_s26, 1024  }
 0x23b   : > { %1434 = vsyncadd (!%p1115_p6), %s815_s26, 4294966272  ;;  %s31_s14 = sadd.s32 1, %s1457_s14   ;;  %s1986_s30 = smov %s1441_s10 }
 0x23c   : > { %p28_p10 = scmp.ge.s32.totalorder %s31_s14, 4   ;;  %s1987_s10 = smov %s1445_s11 }
 0x23d   : > { %s1988_s11 = smov %s1696_s28  ;;  %s1989_s12 = smov %s1453_s13 }
 0x23e   : > { %s1990_s13 = smov %s1992_s22  ;;  %30 = sbr.rel (!%p28_p10) target bundleno = 16 (0x10), region = 146 }
 0x245   :  { %829 = vsyncpa [#allocation3], 1 }
 0x246   :  { %831 = vsyncpa [#allocation3 + $0x1], 1 }
 0x247   :  { %832 = vsyncpa [#allocation6], 1 }
 0x248   :  { %833 = vsyncpa [#allocation9], 1 }
 0x249   :  { %834 = vsyncpa [#allocation4], 1 }
 0x24a   :  { %836 = vsyncpa [#allocation4 + $0x1], 1 }
 0x24b   :  { %837 = vsyncpa [#allocation12], 1 }
 0x24c   :  { %839 = vsyncpa [#allocation12 + $0x1], 1 }

</bundles_post_ra>
